<compile_context>
chip_gen: v5e
topology: v5e:2x2
jax: 0.10.0
libtpu: 0.0.40
codegen_flags: <defaults>
</compile_context>

<pallas_src>
import functools

import jax
import jax.numpy as jnp
from jax import lax
from jax.experimental import pallas as pl
from jax.experimental.pallas import tpu as pltpu

# ----------------------------- module config --------------------------------
EMBED_DIM = 32                    # embedding_dim
ATTN_DIM = 32                     # attention_dim (total across heads)
NUM_HEADS = 4                     # module-level num_heads in the spec
HEAD_DIM = ATTN_DIM // NUM_HEADS  # per-head attention dim (dk in the spec)
FF_DIM = 256                      # module-level ff_dim in the spec
LN_EPS = 1e-5                     # PyTorch nn.LayerNorm default eps


# ----------------------------- fused Pallas kernel ---------------------------
def _encoder_block_kernel(x_ref,
                          wqkv_ref, bqkv_ref, wo_ref, bo_ref,
                          g1_ref, be1_ref,
                          w1_ref, bf1_ref, w2_ref, bf2_ref,
                          g2_ref, be2_ref,
                          o_ref,
                          *, num_heads, head_dim, use_mask):
    """Fused EcoderBlock forward for ONE batch element (grid over batch).

    x_ref block: (1, S, D) f32.  Matmul weights arrive pre-cast to bf16;
    biases / LN params are f32.  All matmuls accumulate in f32 on the MXU.
    """
    _, S, D = x_ref.shape
    H, hd = num_heads, head_dim
    A = H * hd

    x = x_ref[0]                                     # (S, D) f32 (for residual)
    x_bf = x.astype(jnp.bfloat16)

    # ---- fused QKV projection: one (S, D) @ (D, 3A) matmul -----------------
    qkv = jnp.dot(x_bf, wqkv_ref[...],
                  preferred_element_type=jnp.float32) + bqkv_ref[...]   # (S, 3A)
    q = qkv[:, 0:A]
    k = qkv[:, A:2 * A]
    v = qkv[:, 2 * A:3 * A]

    scale = 1.0 / (hd ** 0.5)                        # dk = per-head dim
    if use_mask:                                     # built once, reused per head
        row = lax.broadcasted_iota(jnp.int32, (S, S), 0)
        col = lax.broadcasted_iota(jnp.int32, (S, S), 1)
        keep = col <= row

    # ---- per-head attention (static unroll; heads sliced from fused QKV) ----
    # The score / context matmuls are intrinsically (S x S x hd) per head at
    # this config; bf16 inputs + f32 accumulation on the MXU.
    heads = []
    for h in range(H):
        sl = slice(h * hd, (h + 1) * hd)
        qh = q[:, sl].astype(jnp.bfloat16)           # (S, hd)
        kh = k[:, sl].astype(jnp.bfloat16)
        vh = v[:, sl].astype(jnp.bfloat16)

        s = jnp.einsum('qe,ke->qk', qh, kh,
                       preferred_element_type=jnp.float32) * scale     # (S, S)
        if use_mask:
            s = jnp.where(keep, s, -1e30)            # finite -> no NaN risk

        m = jnp.max(s, axis=-1, keepdims=True)
        e = jnp.exp(s - m)
        denom = jnp.sum(e, axis=-1, keepdims=True)
        p = e * pl.reciprocal(denom, approx=True)    # EUP reciprocal (free slot)

        heads.append(jnp.dot(p.astype(jnp.bfloat16), vh,
                             preferred_element_type=jnp.float32))       # (S, hd)

    ctx = jnp.concatenate(heads, axis=-1)            # (S, A) == concat(heads)

    # ---- single output projection over the full Wo --------------------------
    att = jnp.dot(ctx.astype(jnp.bfloat16), wo_ref[...],
                  preferred_element_type=jnp.float32) + bo_ref[...]     # (S, D)

    # ---- residual + LayerNorm 1 (f32) ---------------------------------------
    y = x + att
    mu = jnp.mean(y, axis=-1, keepdims=True)
    var = jnp.mean((y - mu) ** 2, axis=-1, keepdims=True)
    y = (y - mu) * lax.rsqrt(var + LN_EPS) * g1_ref[...] + be1_ref[...]

    # ---- feed-forward: relu(y @ W1 + b1) @ W2 + b2 (bf16 MXU, f32 acc) -------
    hmid = jnp.dot(y.astype(jnp.bfloat16), w1_ref[...],
                   preferred_element_type=jnp.float32) + bf1_ref[...]   # (S, FF)
    hmid = jnp.maximum(hmid, 0.0)
    f = jnp.dot(hmid.astype(jnp.bfloat16), w2_ref[...],
                preferred_element_type=jnp.float32) + bf2_ref[...]      # (S, D)

    # ---- residual + LayerNorm 2 (f32) ----------------------------------------
    z = y + f
    mu = jnp.mean(z, axis=-1, keepdims=True)
    var = jnp.mean((z - mu) ** 2, axis=-1, keepdims=True)
    z = (z - mu) * lax.rsqrt(var + LN_EPS) * g2_ref[...] + be2_ref[...]

    o_ref[0] = z


# ----------------------------- wrapper ---------------------------------------
@functools.partial(jax.jit, static_argnames=("use_mask",))
def encoder_block_forward(kparams, x, use_mask=False):
    B, S, D = x.shape
    H, hd, A = NUM_HEADS, HEAD_DIM, ATTN_DIM

    kernel = functools.partial(_encoder_block_kernel, num_heads=H,
                               head_dim=hd, use_mask=use_mask)

    rep = lambda b: (0, 0)   # weights/biases: same (full) block every grid step
    return pl.pallas_call(
        kernel,
        out_shape=jax.ShapeDtypeStruct((B, S, D), jnp.float32),
        grid=(B,),
        in_specs=[
            pl.BlockSpec((1, S, D), lambda b: (b, 0, 0)),   # x  (per-batch)
            pl.BlockSpec((D, 3 * A), rep),                  # wqkv (bf16)
            pl.BlockSpec((1, 3 * A), rep),                  # bqkv (f32)
            pl.BlockSpec((A, D), rep),                      # wo   (bf16)
            pl.BlockSpec((1, D), rep),                      # bo
            pl.BlockSpec((1, D), rep),                      # ln1 gamma
            pl.BlockSpec((1, D), rep),                      # ln1 beta
            pl.BlockSpec((D, FF_DIM), rep),                 # w1   (bf16)
            pl.BlockSpec((1, FF_DIM), rep),                 # b1
            pl.BlockSpec((FF_DIM, D), rep),                 # w2   (bf16)
            pl.BlockSpec((1, D), rep),                      # b2
            pl.BlockSpec((1, D), rep),                      # ln2 gamma
            pl.BlockSpec((1, D), rep),                      # ln2 beta
        ],
        out_specs=pl.BlockSpec((1, S, D), lambda b: (b, 0, 0)),
        compiler_params=pltpu.CompilerParams(
            dimension_semantics=("parallel",),              # 2 TCs on v7x
            vmem_limit_bytes=32 * 1024 * 1024),
    )(x,
      kparams["wqkv"], kparams["bqkv"], kparams["wo"], kparams["bo"],
      kparams["ln1_g"], kparams["ln1_b"],
      kparams["w1"], kparams["b1"], kparams["w2"], kparams["b2"],
      kparams["ln2_g"], kparams["ln2_b"])


# ----------------------------- params & reference ----------------------------
def init_params(key):
    ks = jax.random.split(key, 6)

    def lin(k, fan_in, fan_out):
        kw, kb = jax.random.split(k)
        bound = 1.0 / (fan_in ** 0.5)          # torch nn.Linear-style init
        w = jax.random.uniform(kw, (fan_in, fan_out), jnp.float32, -bound, bound)
        b = jax.random.uniform(kb, (1, fan_out), jnp.float32, -bound, bound)
        return w, b

    wq, bq = lin(ks[0], EMBED_DIM, ATTN_DIM)
    wk, bk = lin(ks[1], EMBED_DIM, ATTN_DIM)
    wv, bv = lin(ks[2], EMBED_DIM, ATTN_DIM)
    wo, bo = lin(ks[3], ATTN_DIM, EMBED_DIM)
    w1, b1 = lin(ks[4], EMBED_DIM, FF_DIM)
    w2, b2 = lin(ks[5], FF_DIM, EMBED_DIM)
    return dict(wq=wq, bq=bq, wk=wk, bk=bk, wv=wv, bv=bv, wo=wo, bo=bo,
                w1=w1, b1=b1, w2=w2, b2=b2,
                ln1_g=jnp.ones((1, EMBED_DIM), jnp.float32),
                ln1_b=jnp.zeros((1, EMBED_DIM), jnp.float32),
                ln2_g=jnp.ones((1, EMBED_DIM), jnp.float32),
                ln2_b=jnp.zeros((1, EMBED_DIM), jnp.float32))


def prepare_kernel_params(params):
    """One-time restructuring (outside jit): fuse QKV and cast matmul weights
    to bf16.  Biases / LayerNorm params stay f32 (added after f32 accumulation)."""
    wqkv = jnp.concatenate([params["wq"], params["wk"], params["wv"]], axis=1)
    bqkv = jnp.concatenate([params["bq"], params["bk"], params["bv"]], axis=1)
    return dict(
        wqkv=wqkv.astype(jnp.bfloat16), bqkv=bqkv,
        wo=params["wo"].astype(jnp.bfloat16), bo=params["bo"],
        ln1_g=params["ln1_g"], ln1_b=params["ln1_b"],
        w1=params["w1"].astype(jnp.bfloat16), b1=params["b1"],
        w2=params["w2"].astype(jnp.bfloat16), b2=params["b2"],
        ln2_g=params["ln2_g"], ln2_b=params["ln2_b"])


def _layernorm_ref(x, g, b):
    mu = jnp.mean(x, axis=-1, keepdims=True)
    var = jnp.mean((x - mu) ** 2, axis=-1, keepdims=True)
    return (x - mu) * lax.rsqrt(var + LN_EPS) * g + b


def encoder_block_reference(params, x, use_mask=False):
    """Plain-JAX f32 mirror of the PyTorch EcoderBlock forward (per-head loop
    exactly like the torch module) — used only to validate the fused kernel."""
    H, hd = NUM_HEADS, HEAD_DIM
    S = x.shape[1]
    q = x @ params["wq"] + params["bq"]
    k = x @ params["wk"] + params["bk"]
    v = x @ params["wv"] + params["bv"]
    heads = []
    for h in range(H):
        sl = slice(h * hd, (h + 1) * hd)
        qh, kh, vh = q[..., sl], k[..., sl], v[..., sl]
        s = jnp.einsum('bqe,bke->bqk', qh, kh) / (hd ** 0.5)
        if use_mask:
            mask = jnp.tril(jnp.ones((S, S), bool))
            s = jnp.where(mask[None], s, -jnp.inf)
        p = jax.nn.softmax(s, axis=-1)
        heads.append(jnp.einsum('bqk,bke->bqe', p, vh))
    att = jnp.concatenate(heads, axis=-1) @ params["wo"] + params["bo"]
    y = _layernorm_ref(x + att, params["ln1_g"], params["ln1_b"])
    f = jnp.maximum(y @ params["w1"] + params["b1"], 0.0) @ params["w2"] + params["b2"]
    return _layernorm_ref(y + f, params["ln2_g"], params["ln2_b"])


# ----------------------------- main -------------------------------------------
if __name__ == "__main__":
    key = jax.random.PRNGKey(0)
    kp, kx = jax.random.split(key)

    params = init_params(kp)
    kparams = prepare_kernel_params(params)      # one-time fuse + bf16 cast

    batch, seq = 2, 8
    x = jax.random.normal(kx, (batch, seq, EMBED_DIM), jnp.float32)

    out = encoder_block_forward(kparams, x)      # EcoderBlock default: use_mask=False
    out = jax.block_until_ready(out)

    ref = encoder_block_reference(params, x)
    assert out.shape == (batch, seq, EMBED_DIM)
    assert bool(jnp.all(jnp.isfinite(out)))
    # bf16 MXU operands vs. f32 reference -> slightly looser tolerance.
    assert bool(jnp.allclose(out, ref, atol=2e-2, rtol=2e-2))
    print("KERNEL_OK")
</pallas_src>

<mosaic_0001>
module attributes {stable_mosaic.version = 11 : i64} {
  func.func @_encoder_block_kernel(%arg0: i32, %arg1: memref<1x8x32xf32, #tpu.memory_space<vmem>>, %arg2: memref<32x96xbf16, #tpu.memory_space<vmem>>, %arg3: memref<1x96xf32, #tpu.memory_space<vmem>>, %arg4: memref<32x32xbf16, #tpu.memory_space<vmem>>, %arg5: memref<1x32xf32, #tpu.memory_space<vmem>>, %arg6: memref<1x32xf32, #tpu.memory_space<vmem>>, %arg7: memref<1x32xf32, #tpu.memory_space<vmem>>, %arg8: memref<32x256xbf16, #tpu.memory_space<vmem>>, %arg9: memref<1x256xf32, #tpu.memory_space<vmem>>, %arg10: memref<256x32xbf16, #tpu.memory_space<vmem>>, %arg11: memref<1x32xf32, #tpu.memory_space<vmem>>, %arg12: memref<1x32xf32, #tpu.memory_space<vmem>>, %arg13: memref<1x32xf32, #tpu.memory_space<vmem>>, %arg14: memref<1x8x32xf32, #tpu.memory_space<vmem>>) attributes {dimension_semantics = [#tpu.dimension_semantics<parallel>], iteration_bounds = array<i64: 2>, scalar_prefetch = 0 : i64, scratch_operands = 0 : i64, tpu.core_type = #tpu.core_type<tc>, window_params = [{transform_indices = @transform_0, window_bounds = array<i64: 1, 8, 32>}, {pipeline_mode = #tpu.pipeline_mode<synchronous>, transform_indices = @transform_1, window_bounds = array<i64: 32, 96>}, {pipeline_mode = #tpu.pipeline_mode<synchronous>, transform_indices = @transform_2, window_bounds = array<i64: 1, 96>}, {pipeline_mode = #tpu.pipeline_mode<synchronous>, transform_indices = @transform_3, window_bounds = array<i64: 32, 32>}, {pipeline_mode = #tpu.pipeline_mode<synchronous>, transform_indices = @transform_4, window_bounds = array<i64: 1, 32>}, {pipeline_mode = #tpu.pipeline_mode<synchronous>, transform_indices = @transform_5, window_bounds = array<i64: 1, 32>}, {pipeline_mode = #tpu.pipeline_mode<synchronous>, transform_indices = @transform_6, window_bounds = array<i64: 1, 32>}, {pipeline_mode = #tpu.pipeline_mode<synchronous>, transform_indices = @transform_7, window_bounds = array<i64: 32, 256>}, {pipeline_mode = #tpu.pipeline_mode<synchronous>, transform_indices = @transform_8, window_bounds = array<i64: 1, 256>}, {pipeline_mode = #tpu.pipeline_mode<synchronous>, transform_indices = @transform_9, window_bounds = array<i64: 256, 32>}, {pipeline_mode = #tpu.pipeline_mode<synchronous>, transform_indices = @transform_10, window_bounds = array<i64: 1, 32>}, {pipeline_mode = #tpu.pipeline_mode<synchronous>, transform_indices = @transform_11, window_bounds = array<i64: 1, 32>}, {pipeline_mode = #tpu.pipeline_mode<synchronous>, transform_indices = @transform_12, window_bounds = array<i64: 1, 32>}, {transform_indices = @transform_13, window_bounds = array<i64: 1, 8, 32>}]} {
    %c0 = arith.constant 0 : index
    %c0_0 = arith.constant 0 : index
    %c0_1 = arith.constant 0 : index
    %0 = vector.load %arg1[%c0, %c0_0, %c0_1] : memref<1x8x32xf32, #tpu.memory_space<vmem>>, vector<1x8x32xf32>
    %1 = vector.shape_cast %0 : vector<1x8x32xf32> to vector<8x32xf32>
    %2 = arith.truncf %1 : vector<8x32xf32> to vector<8x32xbf16>
    %c0_2 = arith.constant 0 : index
    %c0_3 = arith.constant 0 : index
    %3 = vector.load %arg2[%c0_2, %c0_3] : memref<32x96xbf16, #tpu.memory_space<vmem>>, vector<32x96xbf16>
    %cst = arith.constant dense<0.000000e+00> : vector<8x96xf32>
    %4 = tpu.matmul %2, %3, %cst {dimension_numbers = #tpu.dot_dimension_numbers<[1], [0], [0], [1], [0, 0, 1, 1], [], []>} : vector<8x32xbf16>, vector<32x96xbf16>, vector<8x96xf32> -> vector<8x96xf32>
    %c0_4 = arith.constant 0 : index
    %c0_5 = arith.constant 0 : index
    %5 = vector.load %arg3[%c0_4, %c0_5] : memref<1x96xf32, #tpu.memory_space<vmem>>, vector<1x96xf32>
    %6 = vector.broadcast %5 : vector<1x96xf32> to vector<8x96xf32>
    %7 = arith.addf %4, %6 : vector<8x96xf32>
    %8 = vector.extract_strided_slice %7 {offsets = [0, 0], sizes = [8, 32], strides = [1, 1]} : vector<8x96xf32> to vector<8x32xf32>
    %9 = vector.extract_strided_slice %7 {offsets = [0, 32], sizes = [8, 32], strides = [1, 1]} : vector<8x96xf32> to vector<8x32xf32>
    %10 = vector.extract_strided_slice %7 {offsets = [0, 64], sizes = [8, 32], strides = [1, 1]} : vector<8x96xf32> to vector<8x32xf32>
    %11 = vector.extract_strided_slice %8 {offsets = [0, 0], sizes = [8, 8], strides = [1, 1]} : vector<8x32xf32> to vector<8x8xf32>
    %12 = arith.truncf %11 : vector<8x8xf32> to vector<8x8xbf16>
    %13 = vector.extract_strided_slice %9 {offsets = [0, 0], sizes = [8, 8], strides = [1, 1]} : vector<8x32xf32> to vector<8x8xf32>
    %14 = arith.truncf %13 : vector<8x8xf32> to vector<8x8xbf16>
    %15 = vector.extract_strided_slice %10 {offsets = [0, 0], sizes = [8, 8], strides = [1, 1]} : vector<8x32xf32> to vector<8x8xf32>
    %16 = arith.truncf %15 : vector<8x8xf32> to vector<8x8xbf16>
    "tpu.trace_start"() <{level = 10 : i32, message = "qe,ke->qk"}> : () -> ()
    %cst_6 = arith.constant dense<0.000000e+00> : vector<8x8xf32>
    %17 = tpu.matmul %12, %14, %cst_6 {dimension_numbers = #tpu.dot_dimension_numbers<[1], [1], [0], [0], [0, 0, 1, 0], [], []>} : vector<8x8xbf16>, vector<8x8xbf16>, vector<8x8xf32> -> vector<8x8xf32>
    "tpu.trace_stop"() : () -> ()
    %cst_7 = arith.constant 0.353553385 : f32
    %18 = vector.broadcast %cst_7 : f32 to vector<8x8xf32>
    %19 = arith.mulf %17, %18 : vector<8x8xf32>
    %cst_8 = arith.constant dense<0xFF800000> : vector<8xf32>
    %20 = vector.multi_reduction <maximumf>, %19, %cst_8 [1] : vector<8x8xf32> to vector<8xf32>
    %21 = vector.shape_cast %20 : vector<8xf32> to vector<8x1xf32>
    %22 = vector.broadcast %21 : vector<8x1xf32> to vector<8x8xf32>
    %23 = arith.subf %19, %22 : vector<8x8xf32>
    %24 = math.exp %23 : vector<8x8xf32>
    %cst_9 = arith.constant dense<0.000000e+00> : vector<8xf32>
    %25 = vector.multi_reduction <add>, %24, %cst_9 [1] : vector<8x8xf32> to vector<8xf32>
    %26 = vector.shape_cast %25 : vector<8xf32> to vector<8x1xf32>
    %27 = tpu.reciprocal %26 {approx = true} : vector<8x1xf32> -> vector<8x1xf32>
    %28 = vector.broadcast %27 : vector<8x1xf32> to vector<8x8xf32>
    %29 = arith.mulf %24, %28 : vector<8x8xf32>
    %30 = arith.truncf %29 : vector<8x8xf32> to vector<8x8xbf16>
    %cst_10 = arith.constant dense<0.000000e+00> : vector<8x8xf32>
    %31 = tpu.matmul %30, %16, %cst_10 {dimension_numbers = #tpu.dot_dimension_numbers<[1], [0], [0], [1], [0, 0, 1, 1], [], []>} : vector<8x8xbf16>, vector<8x8xbf16>, vector<8x8xf32> -> vector<8x8xf32>
    %32 = vector.extract_strided_slice %8 {offsets = [0, 8], sizes = [8, 8], strides = [1, 1]} : vector<8x32xf32> to vector<8x8xf32>
    %33 = arith.truncf %32 : vector<8x8xf32> to vector<8x8xbf16>
    %34 = vector.extract_strided_slice %9 {offsets = [0, 8], sizes = [8, 8], strides = [1, 1]} : vector<8x32xf32> to vector<8x8xf32>
    %35 = arith.truncf %34 : vector<8x8xf32> to vector<8x8xbf16>
    %36 = vector.extract_strided_slice %10 {offsets = [0, 8], sizes = [8, 8], strides = [1, 1]} : vector<8x32xf32> to vector<8x8xf32>
    %37 = arith.truncf %36 : vector<8x8xf32> to vector<8x8xbf16>
    "tpu.trace_start"() <{level = 10 : i32, message = "qe,ke->qk"}> : () -> ()
    %cst_11 = arith.constant dense<0.000000e+00> : vector<8x8xf32>
    %38 = tpu.matmul %33, %35, %cst_11 {dimension_numbers = #tpu.dot_dimension_numbers<[1], [1], [0], [0], [0, 0, 1, 0], [], []>} : vector<8x8xbf16>, vector<8x8xbf16>, vector<8x8xf32> -> vector<8x8xf32>
    "tpu.trace_stop"() : () -> ()
    %cst_12 = arith.constant 0.353553385 : f32
    %39 = vector.broadcast %cst_12 : f32 to vector<8x8xf32>
    %40 = arith.mulf %38, %39 : vector<8x8xf32>
    %cst_13 = arith.constant dense<0xFF800000> : vector<8xf32>
    %41 = vector.multi_reduction <maximumf>, %40, %cst_13 [1] : vector<8x8xf32> to vector<8xf32>
    %42 = vector.shape_cast %41 : vector<8xf32> to vector<8x1xf32>
    %43 = vector.broadcast %42 : vector<8x1xf32> to vector<8x8xf32>
    %44 = arith.subf %40, %43 : vector<8x8xf32>
    %45 = math.exp %44 : vector<8x8xf32>
    %cst_14 = arith.constant dense<0.000000e+00> : vector<8xf32>
    %46 = vector.multi_reduction <add>, %45, %cst_14 [1] : vector<8x8xf32> to vector<8xf32>
    %47 = vector.shape_cast %46 : vector<8xf32> to vector<8x1xf32>
    %48 = tpu.reciprocal %47 {approx = true} : vector<8x1xf32> -> vector<8x1xf32>
    %49 = vector.broadcast %48 : vector<8x1xf32> to vector<8x8xf32>
    %50 = arith.mulf %45, %49 : vector<8x8xf32>
    %51 = arith.truncf %50 : vector<8x8xf32> to vector<8x8xbf16>
    %cst_15 = arith.constant dense<0.000000e+00> : vector<8x8xf32>
    %52 = tpu.matmul %51, %37, %cst_15 {dimension_numbers = #tpu.dot_dimension_numbers<[1], [0], [0], [1], [0, 0, 1, 1], [], []>} : vector<8x8xbf16>, vector<8x8xbf16>, vector<8x8xf32> -> vector<8x8xf32>
    %53 = vector.extract_strided_slice %8 {offsets = [0, 16], sizes = [8, 8], strides = [1, 1]} : vector<8x32xf32> to vector<8x8xf32>
    %54 = arith.truncf %53 : vector<8x8xf32> to vector<8x8xbf16>
    %55 = vector.extract_strided_slice %9 {offsets = [0, 16], sizes = [8, 8], strides = [1, 1]} : vector<8x32xf32> to vector<8x8xf32>
    %56 = arith.truncf %55 : vector<8x8xf32> to vector<8x8xbf16>
    %57 = vector.extract_strided_slice %10 {offsets = [0, 16], sizes = [8, 8], strides = [1, 1]} : vector<8x32xf32> to vector<8x8xf32>
    %58 = arith.truncf %57 : vector<8x8xf32> to vector<8x8xbf16>
    "tpu.trace_start"() <{level = 10 : i32, message = "qe,ke->qk"}> : () -> ()
    %cst_16 = arith.constant dense<0.000000e+00> : vector<8x8xf32>
    %59 = tpu.matmul %54, %56, %cst_16 {dimension_numbers = #tpu.dot_dimension_numbers<[1], [1], [0], [0], [0, 0, 1, 0], [], []>} : vector<8x8xbf16>, vector<8x8xbf16>, vector<8x8xf32> -> vector<8x8xf32>
    "tpu.trace_stop"() : () -> ()
    %cst_17 = arith.constant 0.353553385 : f32
    %60 = vector.broadcast %cst_17 : f32 to vector<8x8xf32>
    %61 = arith.mulf %59, %60 : vector<8x8xf32>
    %cst_18 = arith.constant dense<0xFF800000> : vector<8xf32>
    %62 = vector.multi_reduction <maximumf>, %61, %cst_18 [1] : vector<8x8xf32> to vector<8xf32>
    %63 = vector.shape_cast %62 : vector<8xf32> to vector<8x1xf32>
    %64 = vector.broadcast %63 : vector<8x1xf32> to vector<8x8xf32>
    %65 = arith.subf %61, %64 : vector<8x8xf32>
    %66 = math.exp %65 : vector<8x8xf32>
    %cst_19 = arith.constant dense<0.000000e+00> : vector<8xf32>
    %67 = vector.multi_reduction <add>, %66, %cst_19 [1] : vector<8x8xf32> to vector<8xf32>
    %68 = vector.shape_cast %67 : vector<8xf32> to vector<8x1xf32>
    %69 = tpu.reciprocal %68 {approx = true} : vector<8x1xf32> -> vector<8x1xf32>
    %70 = vector.broadcast %69 : vector<8x1xf32> to vector<8x8xf32>
    %71 = arith.mulf %66, %70 : vector<8x8xf32>
    %72 = arith.truncf %71 : vector<8x8xf32> to vector<8x8xbf16>
    %cst_20 = arith.constant dense<0.000000e+00> : vector<8x8xf32>
    %73 = tpu.matmul %72, %58, %cst_20 {dimension_numbers = #tpu.dot_dimension_numbers<[1], [0], [0], [1], [0, 0, 1, 1], [], []>} : vector<8x8xbf16>, vector<8x8xbf16>, vector<8x8xf32> -> vector<8x8xf32>
    %74 = vector.extract_strided_slice %8 {offsets = [0, 24], sizes = [8, 8], strides = [1, 1]} : vector<8x32xf32> to vector<8x8xf32>
    %75 = arith.truncf %74 : vector<8x8xf32> to vector<8x8xbf16>
    %76 = vector.extract_strided_slice %9 {offsets = [0, 24], sizes = [8, 8], strides = [1, 1]} : vector<8x32xf32> to vector<8x8xf32>
    %77 = arith.truncf %76 : vector<8x8xf32> to vector<8x8xbf16>
    %78 = vector.extract_strided_slice %10 {offsets = [0, 24], sizes = [8, 8], strides = [1, 1]} : vector<8x32xf32> to vector<8x8xf32>
    %79 = arith.truncf %78 : vector<8x8xf32> to vector<8x8xbf16>
    "tpu.trace_start"() <{level = 10 : i32, message = "qe,ke->qk"}> : () -> ()
    %cst_21 = arith.constant dense<0.000000e+00> : vector<8x8xf32>
    %80 = tpu.matmul %75, %77, %cst_21 {dimension_numbers = #tpu.dot_dimension_numbers<[1], [1], [0], [0], [0, 0, 1, 0], [], []>} : vector<8x8xbf16>, vector<8x8xbf16>, vector<8x8xf32> -> vector<8x8xf32>
    "tpu.trace_stop"() : () -> ()
    %cst_22 = arith.constant 0.353553385 : f32
    %81 = vector.broadcast %cst_22 : f32 to vector<8x8xf32>
    %82 = arith.mulf %80, %81 : vector<8x8xf32>
    %cst_23 = arith.constant dense<0xFF800000> : vector<8xf32>
    %83 = vector.multi_reduction <maximumf>, %82, %cst_23 [1] : vector<8x8xf32> to vector<8xf32>
    %84 = vector.shape_cast %83 : vector<8xf32> to vector<8x1xf32>
    %85 = vector.broadcast %84 : vector<8x1xf32> to vector<8x8xf32>
    %86 = arith.subf %82, %85 : vector<8x8xf32>
    %87 = math.exp %86 : vector<8x8xf32>
    %cst_24 = arith.constant dense<0.000000e+00> : vector<8xf32>
    %88 = vector.multi_reduction <add>, %87, %cst_24 [1] : vector<8x8xf32> to vector<8xf32>
    %89 = vector.shape_cast %88 : vector<8xf32> to vector<8x1xf32>
    %90 = tpu.reciprocal %89 {approx = true} : vector<8x1xf32> -> vector<8x1xf32>
    %91 = vector.broadcast %90 : vector<8x1xf32> to vector<8x8xf32>
    %92 = arith.mulf %87, %91 : vector<8x8xf32>
    %93 = arith.truncf %92 : vector<8x8xf32> to vector<8x8xbf16>
    %cst_25 = arith.constant dense<0.000000e+00> : vector<8x8xf32>
    %94 = tpu.matmul %93, %79, %cst_25 {dimension_numbers = #tpu.dot_dimension_numbers<[1], [0], [0], [1], [0, 0, 1, 1], [], []>} : vector<8x8xbf16>, vector<8x8xbf16>, vector<8x8xf32> -> vector<8x8xf32>
    %95 = tpu.concatenate %31, %52, %73, %94 in 1 : vector<8x8xf32>, vector<8x8xf32>, vector<8x8xf32>, vector<8x8xf32> -> vector<8x32xf32>
    %96 = arith.truncf %95 : vector<8x32xf32> to vector<8x32xbf16>
    %c0_26 = arith.constant 0 : index
    %c0_27 = arith.constant 0 : index
    %97 = vector.load %arg4[%c0_26, %c0_27] : memref<32x32xbf16, #tpu.memory_space<vmem>>, vector<32x32xbf16>
    %cst_28 = arith.constant dense<0.000000e+00> : vector<8x32xf32>
    %98 = tpu.matmul %96, %97, %cst_28 {dimension_numbers = #tpu.dot_dimension_numbers<[1], [0], [0], [1], [0, 0, 1, 1], [], []>} : vector<8x32xbf16>, vector<32x32xbf16>, vector<8x32xf32> -> vector<8x32xf32>
    %c0_29 = arith.constant 0 : index
    %c0_30 = arith.constant 0 : index
    %99 = vector.load %arg5[%c0_29, %c0_30] : memref<1x32xf32, #tpu.memory_space<vmem>>, vector<1x32xf32>
    %100 = vector.broadcast %99 : vector<1x32xf32> to vector<8x32xf32>
    %101 = arith.addf %98, %100 : vector<8x32xf32>
    %102 = arith.addf %1, %101 : vector<8x32xf32>
    %cst_31 = arith.constant dense<0.000000e+00> : vector<8xf32>
    %103 = vector.multi_reduction <add>, %102, %cst_31 [1] : vector<8x32xf32> to vector<8xf32>
    %104 = vector.shape_cast %103 : vector<8xf32> to vector<8x1xf32>
    %cst_32 = arith.constant 3.200000e+01 : f32
    %105 = vector.broadcast %cst_32 : f32 to vector<8x1xf32>
    %106 = arith.divf %104, %105 : vector<8x1xf32>
    %107 = vector.broadcast %106 : vector<8x1xf32> to vector<8x32xf32>
    %108 = arith.subf %102, %107 : vector<8x32xf32>
    %109 = arith.mulf %108, %108 : vector<8x32xf32>
    %cst_33 = arith.constant dense<0.000000e+00> : vector<8xf32>
    %110 = vector.multi_reduction <add>, %109, %cst_33 [1] : vector<8x32xf32> to vector<8xf32>
    %111 = vector.shape_cast %110 : vector<8xf32> to vector<8x1xf32>
    %cst_34 = arith.constant 3.200000e+01 : f32
    %112 = vector.broadcast %cst_34 : f32 to vector<8x1xf32>
    %113 = arith.divf %111, %112 : vector<8x1xf32>
    %114 = vector.broadcast %106 : vector<8x1xf32> to vector<8x32xf32>
    %115 = arith.subf %102, %114 : vector<8x32xf32>
    %cst_35 = arith.constant 9.99999974E-6 : f32
    %116 = vector.broadcast %cst_35 : f32 to vector<8x1xf32>
    %117 = arith.addf %113, %116 : vector<8x1xf32>
    %118 = math.rsqrt %117 : vector<8x1xf32>
    %119 = vector.broadcast %118 : vector<8x1xf32> to vector<8x32xf32>
    %120 = arith.mulf %115, %119 : vector<8x32xf32>
    %c0_36 = arith.constant 0 : index
    %c0_37 = arith.constant 0 : index
    %121 = vector.load %arg6[%c0_36, %c0_37] : memref<1x32xf32, #tpu.memory_space<vmem>>, vector<1x32xf32>
    %122 = vector.broadcast %121 : vector<1x32xf32> to vector<8x32xf32>
    %123 = arith.mulf %120, %122 : vector<8x32xf32>
    %c0_38 = arith.constant 0 : index
    %c0_39 = arith.constant 0 : index
    %124 = vector.load %arg7[%c0_38, %c0_39] : memref<1x32xf32, #tpu.memory_space<vmem>>, vector<1x32xf32>
    %125 = vector.broadcast %124 : vector<1x32xf32> to vector<8x32xf32>
    %126 = arith.addf %123, %125 : vector<8x32xf32>
    %127 = arith.truncf %126 : vector<8x32xf32> to vector<8x32xbf16>
    %c0_40 = arith.constant 0 : index
    %c0_41 = arith.constant 0 : index
    %128 = vector.load %arg8[%c0_40, %c0_41] : memref<32x256xbf16, #tpu.memory_space<vmem>>, vector<32x256xbf16>
    %cst_42 = arith.constant dense<0.000000e+00> : vector<8x256xf32>
    %129 = tpu.matmul %127, %128, %cst_42 {dimension_numbers = #tpu.dot_dimension_numbers<[1], [0], [0], [1], [0, 0, 1, 1], [], []>} : vector<8x32xbf16>, vector<32x256xbf16>, vector<8x256xf32> -> vector<8x256xf32>
    %c0_43 = arith.constant 0 : index
    %c0_44 = arith.constant 0 : index
    %130 = vector.load %arg9[%c0_43, %c0_44] : memref<1x256xf32, #tpu.memory_space<vmem>>, vector<1x256xf32>
    %131 = vector.broadcast %130 : vector<1x256xf32> to vector<8x256xf32>
    %132 = arith.addf %129, %131 : vector<8x256xf32>
    %cst_45 = arith.constant 0.000000e+00 : f32
    %133 = vector.broadcast %cst_45 : f32 to vector<8x256xf32>
    %134 = arith.maximumf %132, %133 : vector<8x256xf32>
    %135 = arith.truncf %134 : vector<8x256xf32> to vector<8x256xbf16>
    %c0_46 = arith.constant 0 : index
    %c0_47 = arith.constant 0 : index
    %136 = vector.load %arg10[%c0_46, %c0_47] : memref<256x32xbf16, #tpu.memory_space<vmem>>, vector<256x32xbf16>
    %cst_48 = arith.constant dense<0.000000e+00> : vector<8x32xf32>
    %137 = tpu.matmul %135, %136, %cst_48 {dimension_numbers = #tpu.dot_dimension_numbers<[1], [0], [0], [1], [0, 0, 1, 1], [], []>} : vector<8x256xbf16>, vector<256x32xbf16>, vector<8x32xf32> -> vector<8x32xf32>
    %c0_49 = arith.constant 0 : index
    %c0_50 = arith.constant 0 : index
    %138 = vector.load %arg11[%c0_49, %c0_50] : memref<1x32xf32, #tpu.memory_space<vmem>>, vector<1x32xf32>
    %139 = vector.broadcast %138 : vector<1x32xf32> to vector<8x32xf32>
    %140 = arith.addf %137, %139 : vector<8x32xf32>
    %141 = arith.addf %126, %140 : vector<8x32xf32>
    %cst_51 = arith.constant dense<0.000000e+00> : vector<8xf32>
    %142 = vector.multi_reduction <add>, %141, %cst_51 [1] : vector<8x32xf32> to vector<8xf32>
    %143 = vector.shape_cast %142 : vector<8xf32> to vector<8x1xf32>
    %cst_52 = arith.constant 3.200000e+01 : f32
    %144 = vector.broadcast %cst_52 : f32 to vector<8x1xf32>
    %145 = arith.divf %143, %144 : vector<8x1xf32>
    %146 = vector.broadcast %145 : vector<8x1xf32> to vector<8x32xf32>
    %147 = arith.subf %141, %146 : vector<8x32xf32>
    %148 = arith.mulf %147, %147 : vector<8x32xf32>
    %cst_53 = arith.constant dense<0.000000e+00> : vector<8xf32>
    %149 = vector.multi_reduction <add>, %148, %cst_53 [1] : vector<8x32xf32> to vector<8xf32>
    %150 = vector.shape_cast %149 : vector<8xf32> to vector<8x1xf32>
    %cst_54 = arith.constant 3.200000e+01 : f32
    %151 = vector.broadcast %cst_54 : f32 to vector<8x1xf32>
    %152 = arith.divf %150, %151 : vector<8x1xf32>
    %153 = vector.broadcast %145 : vector<8x1xf32> to vector<8x32xf32>
    %154 = arith.subf %141, %153 : vector<8x32xf32>
    %cst_55 = arith.constant 9.99999974E-6 : f32
    %155 = vector.broadcast %cst_55 : f32 to vector<8x1xf32>
    %156 = arith.addf %152, %155 : vector<8x1xf32>
    %157 = math.rsqrt %156 : vector<8x1xf32>
    %158 = vector.broadcast %157 : vector<8x1xf32> to vector<8x32xf32>
    %159 = arith.mulf %154, %158 : vector<8x32xf32>
    %c0_56 = arith.constant 0 : index
    %c0_57 = arith.constant 0 : index
    %160 = vector.load %arg12[%c0_56, %c0_57] : memref<1x32xf32, #tpu.memory_space<vmem>>, vector<1x32xf32>
    %161 = vector.broadcast %160 : vector<1x32xf32> to vector<8x32xf32>
    %162 = arith.mulf %159, %161 : vector<8x32xf32>
    %c0_58 = arith.constant 0 : index
    %c0_59 = arith.constant 0 : index
    %163 = vector.load %arg13[%c0_58, %c0_59] : memref<1x32xf32, #tpu.memory_space<vmem>>, vector<1x32xf32>
    %164 = vector.broadcast %163 : vector<1x32xf32> to vector<8x32xf32>
    %165 = arith.addf %162, %164 : vector<8x32xf32>
    %c0_60 = arith.constant 0 : index
    %c0_61 = arith.constant 0 : index
    %c0_62 = arith.constant 0 : index
    %166 = vector.load %arg14[%c0_60, %c0_61, %c0_62] : memref<1x8x32xf32, #tpu.memory_space<vmem>>, vector<1x8x32xf32>
    %167 = vector.shape_cast %166 : vector<1x8x32xf32> to vector<8x32xf32>
    %168 = vector.shape_cast %165 : vector<8x32xf32> to vector<1x8x32xf32>
    tpu.vector_store %arg14[%c0_60, %c0_61, %c0_62], %168 {strides = array<i32>} : memref<1x8x32xf32, #tpu.memory_space<vmem>>, vector<1x8x32xf32>,
    return
  }
  func.func @transform_0(%arg0: i32) -> (i32, i32, i32) {
    %c0_i32 = arith.constant 0 : i32
    %c0_i32_0 = arith.constant 0 : i32
    %c0_i32_1 = arith.constant 0 : i32
    return %arg0, %c0_i32, %c0_i32_0 : i32, i32, i32
  }
  func.func @transform_1(%arg0: i32) -> (i32, i32) {
    %c0_i32 = arith.constant 0 : i32
    %c0_i32_0 = arith.constant 0 : i32
    %c0_i32_1 = arith.constant 0 : i32
    return %c0_i32, %c0_i32_0 : i32, i32
  }
  func.func @transform_2(%arg0: i32) -> (i32, i32) {
    %c0_i32 = arith.constant 0 : i32
    %c0_i32_0 = arith.constant 0 : i32
    %c0_i32_1 = arith.constant 0 : i32
    return %c0_i32, %c0_i32_0 : i32, i32
  }
  func.func @transform_3(%arg0: i32) -> (i32, i32) {
    %c0_i32 = arith.constant 0 : i32
    %c0_i32_0 = arith.constant 0 : i32
    %c0_i32_1 = arith.constant 0 : i32
    return %c0_i32, %c0_i32_0 : i32, i32
  }
  func.func @transform_4(%arg0: i32) -> (i32, i32) {
    %c0_i32 = arith.constant 0 : i32
    %c0_i32_0 = arith.constant 0 : i32
    %c0_i32_1 = arith.constant 0 : i32
    return %c0_i32, %c0_i32_0 : i32, i32
  }
  func.func @transform_5(%arg0: i32) -> (i32, i32) {
    %c0_i32 = arith.constant 0 : i32
    %c0_i32_0 = arith.constant 0 : i32
    %c0_i32_1 = arith.constant 0 : i32
    return %c0_i32, %c0_i32_0 : i32, i32
  }
  func.func @transform_6(%arg0: i32) -> (i32, i32) {
    %c0_i32 = arith.constant 0 : i32
    %c0_i32_0 = arith.constant 0 : i32
    %c0_i32_1 = arith.constant 0 : i32
    return %c0_i32, %c0_i32_0 : i32, i32
  }
  func.func @transform_7(%arg0: i32) -> (i32, i32) {
    %c0_i32 = arith.constant 0 : i32
    %c0_i32_0 = arith.constant 0 : i32
    %c0_i32_1 = arith.constant 0 : i32
    return %c0_i32, %c0_i32_0 : i32, i32
  }
  func.func @transform_8(%arg0: i32) -> (i32, i32) {
    %c0_i32 = arith.constant 0 : i32
    %c0_i32_0 = arith.constant 0 : i32
    %c0_i32_1 = arith.constant 0 : i32
    return %c0_i32, %c0_i32_0 : i32, i32
  }
  func.func @transform_9(%arg0: i32) -> (i32, i32) {
    %c0_i32 = arith.constant 0 : i32
    %c0_i32_0 = arith.constant 0 : i32
    %c0_i32_1 = arith.constant 0 : i32
    return %c0_i32, %c0_i32_0 : i32, i32
  }
  func.func @transform_10(%arg0: i32) -> (i32, i32) {
    %c0_i32 = arith.constant 0 : i32
    %c0_i32_0 = arith.constant 0 : i32
    %c0_i32_1 = arith.constant 0 : i32
    return %c0_i32, %c0_i32_0 : i32, i32
  }
  func.func @transform_11(%arg0: i32) -> (i32, i32) {
    %c0_i32 = arith.constant 0 : i32
    %c0_i32_0 = arith.constant 0 : i32
    %c0_i32_1 = arith.constant 0 : i32
    return %c0_i32, %c0_i32_0 : i32, i32
  }
  func.func @transform_12(%arg0: i32) -> (i32, i32) {
    %c0_i32 = arith.constant 0 : i32
    %c0_i32_0 = arith.constant 0 : i32
    %c0_i32_1 = arith.constant 0 : i32
    return %c0_i32, %c0_i32_0 : i32, i32
  }
  func.func @transform_13(%arg0: i32) -> (i32, i32, i32) {
    %c0_i32 = arith.constant 0 : i32
    %c0_i32_0 = arith.constant 0 : i32
    %c0_i32_1 = arith.constant 0 : i32
    return %arg0, %c0_i32, %c0_i32_0 : i32, i32, i32
  }
}

</mosaic_0001>

<bundles_post_ra>
// kernel: encoder_block_forward.1
= control target key start
LH: loop header
LB: loop body
LE: loop exit
PB: predicated region body
PF: predicated region fallthrough
CT: control target
= control target key end

     0   :  { %s1760_s0 = inlined_call_operand.vmem [shape: f32[2,8,32], index: 0, kind: input, shape index: {}]   ;;  %s1761_s1 = inlined_call_operand.vmem [shape: bf16[32,96], index: 1, kind: input, shape index: {}]   ;;  %s1762_s2 = inlined_call_operand.vmem [shape: f32[1,96], index: 2, kind: input, shape index: {}]   ;;  %s1763_s3 = inlined_call_operand.vmem [shape: bf16[32,32], index: 3, kind: input, shape index: {}]   ;;  %s1764_s4 = inlined_call_operand.vmem [shape: f32[1,32], index: 4, kind: input, shape index: {}]   ;;  %s1765_s5 = inlined_call_operand.vmem [shape: f32[1,32], index: 5, kind: input, shape index: {}]   ;;  %s1766_s6 = inlined_call_operand.vmem [shape: f32[1,32], index: 6, kind: input, shape index: {}]   ;;  %s1767_s7 = inlined_call_operand.vmem [shape: bf16[32,256], index: 7, kind: input, shape index: {}]   ;;  %s1768_s8 = inlined_call_operand.vmem [shape: f32[1,256], index: 8, kind: input, shape index: {}]   ;;  %s1769_s9 = inlined_call_operand.vmem [shape: bf16[256,32], index: 9, kind: input, shape index: {}]   ;;  %s1770_s10 = inlined_call_operand.vmem [shape: f32[1,32], index: 10, kind: input, shape index: {}]   ;;  %s1771_s11 = inlined_call_operand.vmem [shape: f32[1,32], index: 11, kind: input, shape index: {}]   ;;  %s1772_s12 = inlined_call_operand.vmem [shape: f32[1,32], index: 12, kind: input, shape index: {}]   ;;  %s1773_s13 = inlined_call_operand.hbm [shape: f32[2,8,32], index: 13, kind: output, shape index: {}]  }
   0x1   :  { %1774 = sst [smem:[#allocation6_spill]] %s1760_s0 }
   0x2   :  { %1775 = sst [smem:[#allocation7_spill]] %s1761_s1 }
   0x3   :  { %1776 = sst [smem:[#allocation8_spill]] %s1762_s2 }
   0x4   :  { %18 = vsyncpa [#allocation3], 0 }
   0x5   :  { %20 = vsyncpa [#allocation3 + $0x1], 0  ;;  %s1505_s25 = smov 0   ;;  %s1507_s26 = smov 0  }
   0x6   :  { %s1509_s27 = smov 0   ;;  %s1511_s28 = smov 0  }
   0x7 LB: > { %s1526_s29 = sadd.s32 4294967295, %s1418_s28   ;;  %s1131_s30 = sadd.s32 4294967294, %s1418_s28   ;;  %s1418_s28 = sphi %s1511_s28, %s1787_s28   ;;  %s1414_s27 = sphi %s1509_s27, %s1786_s27   ;;  %s1410_s26 = sphi %s1507_s26, %s1785_s26   ;;  %s1406_s25 = sphi %s1505_s25, %s1784_s25  }
   0x8   : > { %s1530_s14 = sadd.s32 1, %s1418_s28   ;;  %s311_s15 = sadd.s32 1, %s1414_s27 }
   0x9   : > { %s308_s16 = ssub.s32 %s1418_s28, %s1530_s14  ;;  %p321_p0 = scmp.ne.s32.totalorder %s1414_s27, %s1410_s26 }
   0xa   : > { %p309_p1 = scmp.eq.s32.totalorder %s308_s16, 0  ;;  %p322_p2 = scmp.eq.s32.totalorder %s1526_s29, 1 }
   0xb   : > { %p327_p3 = scmp.ne.s32.totalorder %s1410_s26, %s1406_s25  ;;  %p328_p4 = scmp.eq.s32.totalorder %s1131_s30, 1 }
   0xc   : > { %s1541_s17 = scalar_select %p309_p1, %s1414_s27, %s311_s15  }
   0xd   : > { %p1543_p5 = por %p322_p2, %p321_p0  ;;  %p1547_p6 = por %p328_p4, %p327_p3 }
   0xe   : > { %1777 = sst [smem:[#allocation5_spill]] %s1541_s17  ;;  %p1134_p7 = scmp.ge.s32.totalorder %s1418_s28, 1 }
   0xf   : > { %p389_p8 = scmp.lt.s32.totalorder %s1418_s28, 3 }
  0x11   : > { %p390_p9 = pnand %p1134_p7, %p389_p8 }
  0x12   : > { %s1780_s1 = sld [smem:[#allocation7_spill]] (!%p390_p9)  ;;  %p432_p10 = scmp.lt.s32.totalorder (!%p390_p9), %s1526_s29, 1 }
  0x13   : > { %393 = sbr.rel (%p390_p9) target bundleno = 2302 (0x8fe), region = 72  ;;  %s1781_s0 = sld [smem:[#allocation6_spill]] (!%p390_p9) }
  0x14   : > { %s1782_s2 = sld [smem:[#allocation8_spill]] (!%p390_p9)  ;;  %s1420_s22 = smov (!%p390_p9), 88  }
  0x15   : > { %s1421_s23 = smov (!%p390_p9), 96   ;;  %s1425_s15 = smov (!%p390_p9), 80  }
  0x16   : > { %s1426_s16 = smov (!%p390_p9), 64   ;;  %s1427_s20 = smov (!%p390_p9), 112  }
  0x17   : > { %s1428_s21 = smov (!%p390_p9), 56  }
  0x18   : > { %v1250_v0 = vld [vmem:[%s1780_s1 + $0x8] sm:$0xff]  ;;  %v1249_v1 = vld [vmem:[%s1780_s1] sm:$0xff]  ;;  %s433_s24 = scalar_select %p432_p10, %s1526_s29, 1  ;;  %vm459_vm0 = vcmask 261120   ;;  %vm480_vm1 = vcmask 64512   ;;  %vm518_vm2 = vcmask 1043456  }
  0x19   : > { %469 = vmatpush.bf16.msra.mxu1 %v1250_v0  ;;  %vm719_vm3 = vcmask 130048   ;;  %vm721_vm4 = vcmask 195584  }
  0x1a   : > { %s1136_s30 = sshll.u32 %s433_s24, 3  ;;  %v1327_v4 = vld [vmem:[%s1782_s2] ss:$0 sm:$0xff]  ;;  %s1423_s24 = smov 72  }
  0x1b   : > { %s435_s17 = scalar_lea.vmem %s1781_s0, %s1136_s30  ;;  %s1424_s30 = smov 104  }
  0x1c   : > { %v1564_v2 = vld [vmem:[%s435_s17] sm:$0xff]  ;;  %s1422_s17 = smov 120   ;;  %s1246_s0 = sshll.u32 %s1526_s29, 3 }
  0x1d   : > { %470 = vmatpush.bf16.msra.mxu1 %v1249_v1  ;;  %v438_v3 = vpack.c.bf16 %v1564_v2, %v1564_v2 }
  0x20   : > { %1145 = vmatmul.msk.bf16.vlgmr.msra.gmra.mxu1 %vm459_vm0, %v438_v3 }
  0x9d   : > { %v472_v5 = vpop.f32.mrf.mxu1 }
  0x9e   : > { %v473_v6 = vadd.f32 %v1327_v4, %v472_v5 }
  0xa0   : > { %v1572_v7 = vpack.c.bf16 %v473_v6, %v473_v6 }
  0xa2   : > { %537 = vrot.lane.b32.xlu2 %v1572_v7, %s1420_s22  ;;  %478 = vrot.lane.b32.xlu0 %v1572_v7, %s1421_s23  ;;  %s1429_s22 = smov 40   ;;  %s1430_s23 = smov 48  }
  0xa5   : > { %v474_v8 = vpop.f32.mrf.mxu1 }
  0xaa   : > { %535 = vrot.lane.b32.xlu2 %v1572_v7, %s1422_s17  ;;  %s1431_s17 = smov 8  }
  0xb2   : > { %651 = vrot.lane.b32.xlu2 %v1572_v7, %s1423_s24  ;;  %s1432_s24 = smov 16  }
  0xba   : > { %649 = vrot.lane.b32.xlu2 %v1572_v7, %s1424_s30  ;;  %s1433_s30 = smov 24  }
  0xc2   : > { %594 = vrot.lane.b32.xlu2 %v1572_v7, %s1425_s15  ;;  %s1067_s15 = scalar_lea.hbm %s1773_s13, %s1246_s0 }
  0xc3   : > { %s1071_s2 = sshll.u32 %s1067_s15, 4  ;;  %s1072_s2 = int_to_ptr.hbm [resolvable:$true] %s1071_s2 }
  0xfc   : > { %v538_v9 = vpop.permute.xlu2 %537 }
  0xfd   : > { %v543_v31 = vsel %vm480_vm1, %v538_v9, 0 }
 0x104   : > { %v536_v10 = vpop.permute.xlu2 %535 }
 0x10c   : > { %v652_v11 = vpop.permute.xlu2 %651 }
 0x10d   : > { %v657_v33 = vsel %vm480_vm1, %v652_v11, 0 }
 0x114   : > { %v650_v12 = vpop.permute.xlu2 %649  ;;  %v479_v13 = vpop.permute.xlu0 %478 }
 0x115   : > { %v485_v14 = vsel %vm480_vm1, %v479_v13, 0 }
 0x116   : > { %494 = vmatpush.bf16.xpose.msrb.mxu1 %v485_v14 }
 0x11c   : > { %v595_v15 = vpop.permute.xlu2 %594 }
 0x11d   : > { %1146 = vmatmul.msk.bf16.vlgmr.msrb.gmra.mxu1 %vm480_vm1, %v1572_v7  ;;  %v600_v16 = vsel %vm480_vm1, %v595_v15, 0 }
 0x11e   : > { %609 = vmatpush.bf16.xpose.msra.mxu0 %v600_v16 }
 0x19a   : > { %v496_v17 = vpop.f32.mrf.mxu1 }
 0x19b   : > { %v500_v18 = vmul.f32 0.35355338, %v496_v17 }
 0x19d   : > { %v501_v19 = vsel %vm480_vm1, %v500_v18, -inf }
 0x19e   : > { %502 = vmax.xlane.f32.xlu0 %v501_v19 }
 0x1a2   : > { %v498_v20 = vpop.f32.mrf.mxu1 }
 0x211   : > { %v503_v21 = vpop.xlane.xlu0 %502 }
 0x212   : > { %v504_v22 = vsub.f32 %v500_v18, %v503_v21 }
 0x214   : > { %v505_v23 = vmul.f32 1.442695, %v504_v22 }
 0x216   : > { %1334 = vpow2.f32 %v505_v23 }
 0x21c   : > { %v1335_v24 = vpop.eup %1334 }
 0x21d   : > { %v507_v25 = vsel %vm480_vm1, %v1335_v24, 0.0 }
 0x21e   : > { %508 = vadd.xlane.f32.xlu1 %v507_v25  ;;  %v1252_v25 = vld [vmem:[%s1763_s3 + $0x8] sm:$0xff] }
 0x21f   : > { %753 = vmatpush.bf16.msrb.mxu0 %v1252_v25 }
 0x237   : > { %513 = vrot.lane.b32.xlu1 %v1572_v7, %s1426_s16 }
 0x23f   : > { %592 = vrot.lane.b32.xlu1 %v1572_v7, %s1427_s20 }
 0x291   : > { %v509_v26 = vpop.xlane.xlu1 %508 }
 0x292   : > { %1336 = vrcp.f32 %v509_v26  ;;  %v1251_v26 = vld [vmem:[%s1763_s3] sm:$0xff] }
 0x293   : > { %754 = vmatpush.bf16.msrb.mxu0 %v1251_v26 }
 0x298   : > { %v1337_v27 = vpop.eup %1336 }
 0x299   : > { %v511_v28 = vmul.f32 %v1337_v27, %v1335_v24 }
 0x29b   : > { %v512_v32 = vpack.c.bf16 %v511_v28, %v511_v28 }
 0x2a9   : > { %v514_v29 = vpop.permute.xlu1 %513 }
 0x2aa   : > { %v520_v30 = vsel %vm518_vm2, %v514_v29, 0 }
 0x2ab   : > { %529 = vmatpush.bf16.msra.mxu3 %v520_v30 }
 0x2ae   : > { %1147 = vmatmul.msk.bf16.vlgmr.msra.gmra.mxu3 %vm480_vm1, %v512_v32 }
 0x2af   : > { %552 = vmatpush.bf16.xpose.msrb.mxu3 %v543_v31 }
 0x2b1   : > { %v593_v34 = vpop.permute.xlu1 %592 }
 0x2b2   : > { %1150 = vmatmul.msk.bf16.vlgmr.msra.gmra.mxu0 %vm480_vm1, %v593_v34  ;;  %v1328_v34 = vld [vmem:[%s1764_s4] ss:$0 sm:$0xff] }
 0x2b7   : > { %666 = vmatpush.bf16.xpose.msra.mxu3 %v657_v33 }
 0x2be   : > { %1148 = vmatmul.msk.bf16.vlgmr.msrb.gmra.mxu3 %vm480_vm1, %v536_v10 }
 0x2ce   : > { %1152 = vmatmul.msk.bf16.vlgmr.msra.gmra.mxu3 %vm480_vm1, %v650_v12 }
 0x32f   : > { %v611_v35 = vpop.f32.mrf.mxu0 }
 0x330   : > { %v615_v36 = vmul.f32 0.35355338, %v611_v35 }
 0x331   : > { %v1595_v37 = vpop.f32.mrf.mxu3 }
 0x332   : > { %v616_v38 = vsel %vm480_vm1, %v615_v36, -inf }
 0x333   : > { %617 = vmax.xlane.f32.xlu0 %v616_v38 }
 0x337   : > { %v613_v39 = vpop.f32.mrf.mxu0 }
 0x339   : > { %v533_v40 = vpop.f32.mrf.mxu3 }
 0x341   : > { %v554_v41 = vpop.f32.mrf.mxu3 }
 0x342   : > { %v558_v42 = vmul.f32 0.35355338, %v554_v41  ;;  %v1434_v41 = vmov 32.0  }
 0x344   : > { %v559_v43 = vsel %vm480_vm1, %v558_v42, -inf }
 0x345   : > { %560 = vmax.xlane.f32.xlu2 %v559_v43 }
 0x347   : > { %571 = vrot.lane.b32.xlu0 %v1572_v7, %s1428_s21  ;;  %s429_s21 = sand.u32 1, %s1410_s26  }
 0x349   : > { %v556_v44 = vpop.f32.mrf.mxu3 }
 0x351   : > { %v668_v45 = vpop.f32.mrf.mxu3 }
 0x352   : > { %v672_v46 = vmul.f32 0.35355338, %v668_v45 }
 0x354   : > { %v673_v47 = vsel %vm480_vm1, %v672_v46, -inf }
 0x355   : > { %674 = vmax.xlane.f32.xlu1 %v673_v47 }
 0x359   : > { %v670_v48 = vpop.f32.mrf.mxu3 }
 0x3a6   : > { %v618_v49 = vpop.xlane.xlu0 %617 }
 0x3a7   : > { %v619_v50 = vsub.f32 %v615_v36, %v618_v49 }
 0x3a9   : > { %v620_v51 = vmul.f32 1.442695, %v619_v50 }
 0x3ab   : > { %1338 = vpow2.f32 %v620_v51  ;;  %v1173_v51 = vld [vmem:[%s1767_s7 + $0x10] sm:$0xf] }
 0x3b1   : > { %v1339_v52 = vpop.eup %1338 }
 0x3b2   : > { %v622_v53 = vsel %vm480_vm1, %v1339_v52, 0.0 }
 0x3b3   : > { %623 = vadd.xlane.f32.xlu1 %v622_v53  ;;  %v1255_v53 = vld [vmem:[%s1767_s7 + $0x14] sm:$0xf] }
 0x3b8   : > { %v561_v54 = vpop.xlane.xlu2 %560 }
 0x3b9   : > { %v562_v55 = vsub.f32 %v558_v42, %v561_v54  ;;  %v572_v56 = vpop.permute.xlu0 %571 }
 0x3ba   : > { %v577_v57 = vsel %vm518_vm2, %v572_v56, 0 }
 0x3bb   : > { %v563_v58 = vmul.f32 1.442695, %v562_v55  ;;  %586 = vmatpush.bf16.msra.mxu2 %v577_v57  ;;  %v1175_v55 = vld [vmem:[%s1767_s7 + $0x18] sm:$0xf0]  ;;  %v1165_v57 = vld [vmem:[%s1767_s7] sm:$0xf] }
 0x3bc   : > { %v1178_v56 = vor.u32 %v1255_v53, %v1175_v55 }
 0x3bd   : > { %1340 = vpow2.f32 %v563_v58  ;;  %v1254_v58 = vld [vmem:[%s1767_s7 + $0x4] sm:$0xf0] }
 0x3be   : > { %853 = vmatpush.bf16.msrb.mxu3 %v1178_v56 }
 0x3c3   : > { %v1341_v59 = vpop.eup %1340 }
 0x3c4   : > { %v565_v60 = vsel %vm480_vm1, %v1341_v59, 0.0 }
 0x3c5   : > { %566 = vadd.xlane.f32.xlu0 %v565_v60  ;;  %v1166_v60 = vor.u32 %v1254_v58, %v1165_v57 }
 0x3c8   : > { %v675_v61 = vpop.xlane.xlu1 %674 }
 0x3c9   : > { %v676_v62 = vsub.f32 %v672_v46, %v675_v61  ;;  %v1167_v61 = vld [vmem:[%s1767_s7 + $0x8] sm:$0xf0] }
 0x3cb   : > { %v677_v63 = vmul.f32 1.442695, %v676_v62 }
 0x3cd   : > { %1342 = vpow2.f32 %v677_v63  ;;  %v1264_v63 = vld [vmem:[%s1769_s9 + $0x38] sm:$0xff] }
 0x3d3   : > { %v1343_v0 = vpop.eup %1342 }
 0x3d4   : > { %v679_v1 = vsel %vm480_vm1, %v1343_v0, 0.0 }
 0x3d5   : > { %680 = vadd.xlane.f32.xlu2 %v679_v1 }
 0x3d9   : > { %685 = vrot.lane.b32.xlu0 %v1572_v7, %s1429_s22  ;;  %s1135_s22 = sshll.u32 %s429_s21, 3 }
 0x3da   : > { %s431_s1 = scalar_lea.vmem [#allocation2], %s1135_s22  ;;  %s1376_s22 = scalar_lea.hbm %s1773_s13, 16 }
 0x3db   : > { %s1069_s29 = sshll.u32 %s431_s1, 4  ;;  %s1070_s29 = int_to_ptr.vmem [resolvable:$true] %s1069_s29 }
 0x3ed   : > { %628 = vrot.lane.b32.xlu2 %v1572_v7, %s1430_s23  ;;  %s1057_s23 = scalar_lea.sflag [#allocation3], %s429_s21 }
 0x426   : > { %v624_v8 = vpop.xlane.xlu1 %623 }
 0x438   : > { %v567_v3 = vpop.xlane.xlu0 %566 }
 0x439   : > { %1344 = vrcp.f32 %v567_v3 }
 0x43a   : > { %1346 = vrcp.f32 %v624_v8  ;;  %v1262_v8 = vld [vmem:[%s1769_s9 + $0x28] sm:$0xff] }
 0x43f   : > { %v1345_v4 = vpop.eup %1344 }
 0x440   : > { %v569_v5 = vmul.f32 %v1345_v4, %v1341_v59  ;;  %v1347_v11 = vpop.eup %1346  ;;  %v1253_v59 = vld [vmem:[%s1767_s7 + $0x4] sm:$0xf]  ;;  %v1263_v4 = vld [vmem:[%s1769_s9 + $0x30] sm:$0xff] }
 0x441   : > { %v626_v14 = vmul.f32 %v1347_v11, %v1339_v52  ;;  %v1256_v52 = vld [vmem:[%s1767_s7 + $0x14] sm:$0xf0]  ;;  %v1170_v62 = vor.u32 %v1253_v59, %v1167_v61  ;;  %v1269_v11 = vld [vmem:[%s1769_s9 + $0x60] sm:$0xff] }
 0x442   : > { %v570_v6 = vpack.c.bf16 %v569_v5, %v569_v5  ;;  %v1174_v54 = vor.u32 %v1256_v52, %v1173_v51  ;;  %v1271_v5 = vld [vmem:[%s1769_s9 + $0x70] sm:$0xff] }
 0x443   : > { %v627_v18 = vpack.c.bf16 %v626_v14, %v626_v14  ;;  %854 = vmatpush.bf16.msrb.mxu3 %v1170_v62  ;;  %v1260_v14 = vld [vmem:[%s1769_s9 + $0x18] sm:$0xff] }
 0x444   : > { %1149 = vmatmul.msk.bf16.vlgmr.msra.gmra.mxu2 %vm480_vm1, %v570_v6 }
 0x448   : > { %v681_v9 = vpop.xlane.xlu2 %680 }
 0x449   : > { %1348 = vrcp.f32 %v681_v9  ;;  %v1270_v9 = vld [vmem:[%s1769_s9 + $0x68] sm:$0xff] }
 0x44a   : > { %1350 = vrcp.f32 %v1434_v41 }
 0x44b   : > { %v686_v10 = vpop.permute.xlu0 %685 }
 0x44c   : > { %v691_v12 = vsel %vm518_vm2, %v686_v10, 0  ;;  %v1261_v10 = vld [vmem:[%s1769_s9 + $0x20] sm:$0xff] }
 0x44d   : > { %700 = vmatpush.bf16.msrb.mxu2 %v691_v12 }
 0x44f   : > { %v1349_v13 = vpop.eup %1348 }
 0x450   : > { %v683_v15 = vmul.f32 %v1349_v13, %v1343_v0  ;;  %v629_v7 = vpop.permute.xlu2 %628  ;;  %v1272_v0 = vld [vmem:[%s1769_s9 + $0x78] sm:$0xff] }
 0x451   : > { %v634_v16 = vsel %vm518_vm2, %v629_v7, 0  ;;  %996 = vmatpush.bf16.msra.mxu2 %v1264_v63  ;;  %1009 = vmatpush.bf16.msra.mxu0 %v1272_v0 }
 0x452   : > { %643 = vmatpush.bf16.msra.mxu1 %v634_v16  ;;  %v684_v17 = vpack.c.bf16 %v683_v15, %v683_v15  ;;  %v1268_v15 = vld [vmem:[%s1769_s9 + $0x58] sm:$0xff] }
 0x454   : > { %1153 = vmatmul.msk.bf16.vlgmr.msrb.gmra.mxu2 %vm480_vm1, %v684_v17  ;;  %v1259_v17 = vld [vmem:[%s1769_s9 + $0x10] sm:$0xff] }
 0x455   : > { %1151 = vmatmul.msk.bf16.vlgmr.msra.gmra.mxu1 %vm480_vm1, %v627_v18  ;;  %997 = vmatpush.bf16.msra.mxu2 %v1263_v4 }
 0x456   : > { %840 = vmatpush.bf16.msrb.mxu1 %v1174_v54  ;;  %1010 = vmatpush.bf16.msra.mxu0 %v1271_v5  ;;  %v1332_v5 = vld [vmem:[%s1771_s11] ss:$0 sm:$0xff] }
 0x459   : > { %998 = vmatpush.bf16.msra.mxu2 %v1262_v8  ;;  %v1333_v8 = vld [vmem:[%s1772_s12] ss:$0 sm:$0xff] }
 0x45a   : > { %841 = vmatpush.bf16.msrb.mxu1 %v1166_v60  ;;  %1011 = vmatpush.bf16.msra.mxu0 %v1270_v9 }
 0x45d   : > { %999 = vmatpush.bf16.msra.mxu2 %v1261_v10 }
 0x45e   : > { %1012 = vmatpush.bf16.msra.mxu0 %v1269_v11 }
 0x461   : > { %1000 = vmatpush.bf16.msra.mxu2 %v1260_v14 }
 0x462   : > { %1013 = vmatpush.bf16.msra.mxu0 %v1268_v15 }
 0x465   : > { %1001 = vmatpush.bf16.msra.mxu2 %v1259_v17 }
 0x4c7   : > { %v588_v19 = vpop.f32.mrf.mxu2 }
 0x4c8   : > { %707 = vrot.lane.b32.xlu1 %v588_v19, %s1431_s17  ;;  %s1370_s17 = sshra.s32 %s1072_s2, 4  ;;  %s1371_s17 = int_to_ptr.hbm [resolvable:$true] %s1370_s17 }
 0x4c9   : > { %s1372_s0 = scalar_lea.hbm %s1371_s17, 8  ;;  %p1377_p0 = scmp.lt.s32.totalorder %s1371_s17, %s1773_s13 }
 0x4ca   : > { %p1373_p11 = scmp.ne.s32.totalorder %s1371_s17, %s1372_s0  ;;  %p1378_p1 = scmp.lt.s32.totalorder %s1376_s22, %s1372_s0 }
 0x4cc   : > { %p1374_p12 = pnand %p1373_p11, %p1543_p5  ;;  %p1379_p2 = por %p1378_p1, %p1377_p0 }
 0x4ce   : > { %p1375_p13 = pneg %p1374_p12 }
 0x4cf   : > { %v590_v20 = vpop.f32.mrf.mxu2 }
 0x4d0   : > { %v1329_v20 = vld [vmem:[%s1765_s5] ss:$0 sm:$0xff]  ;;  %p1380_p3 = pnand %p1379_p2, %p1375_p13 }
 0x4d2   : > { %v645_v21 = vpop.f32.mrf.mxu1 }
 0x4d3   : > { %711 = vrot.lane.b32.xlu0 %v645_v21, %s1432_s24 }
 0x4d7   : > { %v702_v22 = vpop.f32.mrf.mxu2 }
 0x4da   : > { %v647_v23 = vpop.f32.mrf.mxu1 }
 0x4db   : > { %715 = vrot.lane.b32.xlu0 %v702_v22, %s1433_s30  ;;  %v1330_v22 = vld [vmem:[%s1766_s6] ss:$0 sm:$0xff] }
 0x4df   : > { %v704_v24 = vpop.f32.mrf.mxu2 }
 0x53a   : > { %v708_v28 = vpop.permute.xlu1 %707 }
 0x53b   : > { %v718_v29 = vsel %vm480_vm1, %v1595_v37, %v708_v28  ;;  %v1351_v37 = vpop.eup %1350  ;;  %v1267_v28 = vld [vmem:[%s1769_s9 + $0x50] sm:$0xff] }
 0x53c   : > { %v765_v42 = vmul.f32 32.0, %v1351_v37  ;;  %vm769_vm5 = vweird.f32 %v1351_v37  ;;  %1014 = vmatpush.bf16.msra.mxu0 %v1267_v28 }
 0x53e   : > { %v766_v43 = vsub.f32 1.0, %v765_v42 }
 0x540   : > { %v767_v44 = vmul.f32 %v1351_v37, %v766_v43 }
 0x542   : > { %v768_v45 = vadd.f32 %v1351_v37, %v767_v44 }
 0x544   : > { %v1626_v46 = vsel %vm769_vm5, %v1351_v37, %v768_v45  ;;  %v1331_v45 = vld [vmem:[%s1770_s10] ss:$0 sm:$0xff] }
 0x545   : > { %v712_v27 = vpop.permute.xlu0 %711 }
 0x546   : > { %v720_v30 = vsel %vm719_vm3, %v718_v29, %v712_v27  ;;  %v1258_v27 = vld [vmem:[%s1769_s9 + $0x8] sm:$0xff]  ;;  %v1257_v29 = vld [vmem:[%s1769_s9] sm:$0xff] }
 0x547   : > { %1002 = vmatpush.bf16.msra.mxu2 %v1258_v27 }
 0x54b   : > { %1003 = vmatpush.bf16.msra.mxu2 %v1257_v29 }
 0x54d   : > { %v716_v31 = vpop.permute.xlu0 %715 }
 0x54e   : > { %v722_v32 = vsel %vm721_vm4, %v720_v30, %v716_v31  ;;  %v1266_v30 = vld [vmem:[%s1769_s9 + $0x48] sm:$0xff]  ;;  %v1265_v31 = vld [vmem:[%s1769_s9 + $0x40] sm:$0xff] }
 0x54f   : > { %v723_v33 = vpack.c.bf16 %v722_v32, %v722_v32  ;;  %1015 = vmatpush.bf16.msra.mxu0 %v1266_v30  ;;  %v805_v32 = vld [vmem:[%s1768_s8] sm:$0x3] }
 0x551   : > { %1162 = vmatmul.msk.bf16.vlgmr.msrb.gmra.mxu0 %vm459_vm0, %v723_v33  ;;  %v807_v33 = vperm.slane %v805_v32, 0 }
 0x553   : > { %1016 = vmatpush.bf16.msra.mxu0 %v1265_v31 }
 0x5ce   : > { %v756_v35 = vpop.f32.mrf.mxu0 }
 0x5cf   : > { %v757_v36 = vadd.f32 %v1328_v34, %v756_v35 }
 0x5d1   : > { %v760_v38 = vadd.f32 %v757_v36, %v1564_v2 }
 0x5d3   : > { %v761_v39 = vsel %vm459_vm0, %v760_v38, 0.0 }
 0x5d4   : > { %762 = vadd.xlane.f32.xlu0 %v761_v39 }
 0x5d6   : > { %v758_v40 = vpop.f32.mrf.mxu0 }
 0x647   : > { %v763_v47 = vpop.xlane.xlu0 %762 }
 0x648   : > { %v771_v48 = vmul.f32 %v1626_v46, %v763_v47 }
 0x64a   : > { %v772_v49 = vsub.f32 %v760_v38, %v771_v48  ;;  %v808_v38 = vperm.slane %v805_v32, 1 }
 0x64c   : > { %v773_v50 = vmul.f32 %v772_v49, %v772_v49 }
 0x64e   : > { %v774_v2 = vsel %vm459_vm0, %v773_v50, 0.0 }
 0x64f   : > { %775 = vadd.xlane.f32.xlu2 %v774_v2 }
 0x6c2   : > { %v776_v1 = vpop.xlane.xlu2 %775 }
 0x6c3   : > { %v777_v3 = vmul.f32 %v776_v1, %v1626_v46 }
 0x6c5   : > { %v778_v6 = vadd.f32 1e-05, %v777_v3 }
 0x6c7   : > { %1352 = vrsqrt.f32 %v778_v6  ;;  %vm785_vm7 = vweird.f32 %v778_v6 }
 0x6cd   : > { %v1353_v12 = vpop.eup %1352 }
 0x6ce   : > { %v780_v13 = vmul.f32 %v1353_v12, %v778_v6  ;;  %vm786_vm6 = vweird.f32 %v1353_v12 }
 0x6cf   : > { %vm787_vm8 = vmor %vm785_vm7, %vm786_vm6 }
 0x6d0   : > { %v781_v7 = vmul.f32 %v1353_v12, %v780_v13 }
 0x6d2   : > { %v782_v16 = vmul.f32 0.5, %v781_v7 }
 0x6d4   : > { %v783_v18 = vsub.f32 1.5, %v782_v16 }
 0x6d6   : > { %v784_v19 = vmul.f32 %v1353_v12, %v783_v18 }
 0x6d8   : > { %v788_v21 = vsel %vm787_vm8, %v1353_v12, %v784_v19 }
 0x6d9   : > { %v789_v23 = vmul.f32 %v788_v21, %v772_v49 }
 0x6db   : > { %v794_v24 = vmul.f32 %v1329_v20, %v789_v23 }
 0x6dd   : > { %v799_v25 = vadd.f32 %v1330_v22, %v794_v24 }
 0x6df   : > { %v800_v26 = vpack.c.bf16 %v799_v25, %v799_v25 }
 0x6e1   : > { %1179 = vmatmul.msk.bf16.vlgmr.msrb.gmra.mxu1 %vm459_vm0, %v800_v26  ;;  %1180 = vmatmul.msk.bf16.vlgmr.msrb.gmra.mxu3 %vm459_vm0, %v800_v26 }
 0x75e   : > { %v843_v34 = vpop.f32.mrf.mxu1 }
 0x75f   : > { %v844_v35 = vadd.f32 %v843_v34, %v807_v33 }
 0x761   : > { %v860_v36 = vmax.f32 %v844_v35, 0.0 }
 0x763   : > { %v862_v39 = vpack.c.bf16 %v860_v36, %v860_v36 }
 0x764   : > { %v856_v40 = vpop.f32.mrf.mxu3 }
 0x765   : > { %v857_v41 = vadd.f32 %v856_v40, %v808_v38  ;;  %1004 = vmatmul.bf16.vlgmr.msra.gmra.mxu2 %v862_v39 }
 0x766   : > { %v845_v37 = vpop.f32.mrf.mxu1 }
 0x767   : > { %v861_v42 = vmax.f32 %v857_v41, 0.0 }
 0x769   : > { %v863_v43 = vpack.c.bf16 %v861_v42, %v861_v42 }
 0x76b   : > { %1017 = vmatmul.bf16.vlgmr.msra.gmra.mxu0 %v863_v43 }
 0x76c   : > { %v858_v44 = vpop.f32.mrf.mxu3 }
 0x7e8   : > { %v1005_v47 = vpop.f32.mrf.mxu2  ;;  %v1018_v48 = vpop.f32.mrf.mxu0 }
 0x7e9   : > { %v1006_v49 = vadd.f32 %v1331_v45, %v1005_v47 }
 0x7eb   : > { %v1019_v50 = vadd.f32 %v1018_v48, %v1006_v49 }
 0x7ed   : > { %v1022_v2 = vadd.f32 %v1019_v50, %v799_v25 }
 0x7ef   : > { %v1023_v51 = vsel %vm459_vm0, %v1022_v2, 0.0 }
 0x7f0   : > { %v1007_v52 = vpop.f32.mrf.mxu2  ;;  %v1020_v53 = vpop.f32.mrf.mxu0  ;;  %1024 = vadd.xlane.f32.xlu1 %v1023_v51 }
 0x863   : > { %v1025_v54 = vpop.xlane.xlu1 %1024 }
 0x864   : > { %v1026_v55 = vmul.f32 %v1025_v54, %v1626_v46 }
 0x866   : > { %v1027_v56 = vsub.f32 %v1022_v2, %v1026_v55 }
 0x868   : > { %v1028_v57 = vmul.f32 %v1027_v56, %v1027_v56 }
 0x86a   : > { %v1029_v58 = vsel %vm459_vm0, %v1028_v57, 0.0 }
 0x86b   : > { %1030 = vadd.xlane.f32.xlu0 %v1029_v58 }
 0x8de   : > { %v1031_v59 = vpop.xlane.xlu0 %1030 }
 0x8df   : > { %v1032_v60 = vmul.f32 %v1031_v59, %v1626_v46 }
 0x8e1   : > { %v1033_v61 = vadd.f32 1e-05, %v1032_v60 }
 0x8e3   : > { %1354 = vrsqrt.f32 %v1033_v61  ;;  %vm1040_vm10 = vweird.f32 %v1033_v61 }
 0x8e9   : > { %v1355_v62 = vpop.eup %1354 }
 0x8ea   : > { %v1035_v63 = vmul.f32 %v1355_v62, %v1033_v61  ;;  %vm1041_vm9 = vweird.f32 %v1355_v62 }
 0x8eb   : > { %vm1042_vm11 = vmor %vm1040_vm10, %vm1041_vm9 }
 0x8ec   : > { %v1036_v0 = vmul.f32 %v1355_v62, %v1035_v63 }
 0x8ee   : > { %v1037_v1 = vmul.f32 0.5, %v1036_v0 }
 0x8f0   : > { %v1038_v3 = vsub.f32 1.5, %v1037_v1 }
 0x8f2   : > { %v1039_v4 = vmul.f32 %v1355_v62, %v1038_v3 }
 0x8f4   : > { %v1043_v46 = vsel %vm1042_vm11, %v1355_v62, %v1039_v4 }
 0x8f5   : > { %v1044_v6 = vmul.f32 %v1043_v46, %v1027_v56 }
 0x8f7   : > { %v1049_v9 = vmul.f32 %v1332_v5, %v1044_v6 }
 0x8f9   : > { %v1054_v10 = vadd.f32 %v1333_v8, %v1049_v9 }
 0x8fb   : > { %1055 = vst.msk [vmem:[%s431_s1] sm:$0xff] %vm459_vm0, %v1054_v10 }
 0x8fc   : > { %1383 = shalt.err (!%p1380_p3)
}
 0x8fd   : > { %1273 = dma.vmem_to_hbm [thread:$0]  (%p1543_p5), %s1070_s29, 128, %s1072_s2, %s1057_s23  }
 0x8fe PF: > { %p1279_p4 = scmp.ge.s32.totalorder %s1418_s28, 2  ;;  %s1083_s1 = sand.u32 1, %s1406_s25  }
 0x8ff   : > { %s1084_s21 = scalar_lea.sflag [#allocation3], %s1083_s1 }
 0x900   : > { %p1276_p7 = pnand %p1279_p4, %p1547_p6 }
 0x902   : > { %p1277_p8 = pneg %p1276_p7 }
 0x904   : > { %1401 = dma.done.wait (%p1277_p8), %s1084_s21, 128  }
 0x905   : > { %1403 = vsyncadd (%p1277_p8), %s1084_s21, 4294967168  ;;  %s1783_s20 = sld [smem:[#allocation5_spill]]  ;;  %p23_p9 = scmp.ge.s32.totalorder %s1530_s14, 4  }
 0x906   : > { %s1784_s25 = smov %s1410_s26  ;;  %s1785_s26 = smov %s1414_s27 }
 0x907   : > { %s1787_s28 = smov %s1530_s14  ;;  %25 = sbr.rel (!%p23_p9) target bundleno = 7 (0x7), region = 107 }
 0x90b   : > { %s1786_s27 = smov %s1783_s20 }
 0x90c   :  { %1090 = vsyncpa [#allocation3], 1 }
 0x90d   :  { %1092 = vsyncpa [#allocation3 + $0x1], 1 }

</bundles_post_ra>
